<compile_context>
chip_gen: v6e
topology: v6e:2x2x1
jax: 0.10.0
libtpu: 0.0.40
codegen_flags: <defaults>
</compile_context>

<pallas_src>
import functools

import jax
import jax.numpy as jnp
import numpy as np
from jax.experimental import pallas as pl
from jax.experimental.pallas import tpu as pltpu

_LANE = 128
_SUBLANE = 8
_CHUNK = _LANE * _SUBLANE      # 1024: pad N to this so the (R, 128) layout is vreg-dense

_NEG_BIG = -3.0e38             # pad sentinel for predicted returns (never in top-k)
_SMALL_K_MAX = 32              # <= : iterative knock-out; > : fixed-pass threshold select
_BISECT_STEPS = 34             # enough to collapse any int32 interval (+ slack)
_INT32_MIN = -(2 ** 31)
_INT32_MAX = 2 ** 31 - 1


def _backtest_kernel(packed_ref, out_ref, *, n: int, top_k: int):
    # packed_ref: (5, R, 128) f32 in VMEM
    #   row 0: predictions[:, -1] (normalized)   pad = -3e38
    #   row 1: targets[:, -1]     (normalized)   pad = 1
    #   row 2: last feature value (normalized)   pad = 1
    #   row 3: min_vals                          pad = 0
    #   row 4: max_vals                          pad = 1
    # out_ref: (1, 1) f32 in SMEM
    pred_n = packed_ref[0, :, :]
    targ_n = packed_ref[1, :, :]
    feat_n = packed_ref[2, :, :]
    mn = packed_ref[3, :, :]
    mx = packed_ref[4, :, :]

    rng = mx - mn
    last_feat = feat_n * rng + mn
    last_pred = pred_n * rng + mn
    last_targ = targ_n * rng + mn

    # NOTE: no guard against last_feat == 0 (matches the reference, which
    # would also divide by zero there).
    inv_feat = 1.0 / last_feat
    pred_ret = (last_pred - last_feat) * inv_feat   # pad -> ~-3e38
    act_ret = (last_targ - last_feat) * inv_feat    # pad -> exactly 0

    # Benchmark: pads contribute exactly 0, divide by the true N.
    benchmark = jnp.sum(act_ret) / jnp.float32(n)

    if top_k <= _SMALL_K_MAX:
        # Iterative knock-out: ONE global reduction per step, no idx / mask
        # arrays. Ties (measure-zero) are all removed in one step.
        neg_inf = jnp.float32(-jnp.inf)
        pr = pred_ret
        for _ in range(top_k):          # static unroll -> scheduler-visible
            m = jnp.max(pr)
            pr = jnp.where(pr >= m, neg_inf, pr)
        # Selected entries are exactly the ones overwritten to -inf.
        top_sum = jnp.sum(jnp.where(pr == neg_inf, act_ret, 0.0))
    else:
        # Fixed-pass threshold selection (O(34*N) XLU work instead of O(k*N)).
        # Order-preserving int32 key: flip the mantissa/exponent bits of
        # negative floats so signed int32 comparison == float comparison.
        x_i = pltpu.bitcast(pred_ret, jnp.int32)
        key = jnp.where(x_i < 0, x_i ^ jnp.int32(_INT32_MAX), x_i)
        k_f = jnp.float32(top_k)

        # Binary search for the largest threshold t with count(key >= t) >= k.
        # Invariant: count(key >= lo) >= k and answer in [lo, hi].
        def _bisect(_, carry):
            lo, hi = carry
            # ceil((lo + hi) / 2) without int32 overflow.
            mid = (lo >> 1) + (hi >> 1) + ((lo | hi) & 1)
            cnt = jnp.sum((key >= mid).astype(jnp.float32))
            ge = cnt >= k_f
            return (jnp.where(ge, mid, lo), jnp.where(ge, hi, mid - 1))

        t, _ = jax.lax.fori_loop(
            0, _BISECT_STEPS, _bisect,
            (jnp.int32(_INT32_MIN), jnp.int32(_INT32_MAX)), unroll=2)

        gt = key > t
        eq = key == t
        cnt_gt = jnp.sum(gt.astype(jnp.float32))
        cnt_eq = jnp.sum(eq.astype(jnp.float32))
        sum_gt = jnp.sum(jnp.where(gt, act_ret, 0.0))
        sum_eq = jnp.sum(jnp.where(eq, act_ret, 0.0))
        # Boundary ties (measure-zero for real data): average the tied entries.
        top_sum = sum_gt + (k_f - cnt_gt) * sum_eq / cnt_eq

    ai_return = top_sum / jnp.float32(top_k)
    out_ref[0, 0] = ai_return - benchmark


def backtesting_profit_error(predictions, targets, last_features,
                             min_vals, max_vals, choose_top_percent=0.05):
    """predictions/targets: (N, T); last_features/min_vals/max_vals: (N,)."""
    n, _t = predictions.shape
    top_k = int(choose_top_percent * n)
    assert top_k >= 1, "choose_top_percent * N must be >= 1"

    # Host side: only the last timestep is needed -> O(N) data into the kernel.
    last_pred = jnp.asarray(predictions, jnp.float32)[:, -1]
    last_targ = jnp.asarray(targets, jnp.float32)[:, -1]
    feat = jnp.asarray(last_features, jnp.float32)
    mn = jnp.asarray(min_vals, jnp.float32)
    mx = jnp.asarray(max_vals, jnp.float32)

    # Pack all five per-series rows into one (5, R, 128) array with N padded
    # to a multiple of 1024. Pads are self-masking (see kernel docstring), so
    # the kernel needs no iota/validity mask.
    n_pad = ((n + _CHUNK - 1) // _CHUNK) * _CHUNK
    r = n_pad // _LANE
    pad = n_pad - n

    def _pad1(x, v):
        return jnp.pad(x, (0, pad), constant_values=jnp.float32(v))

    packed = jnp.stack([_pad1(last_pred, _NEG_BIG),
                        _pad1(last_targ, 1.0),
                        _pad1(feat, 1.0),
                        _pad1(mn, 0.0),
                        _pad1(mx, 1.0)], axis=0)          # (5, N_pad)
    packed = packed.reshape(5, r, _LANE)                   # (5, R, 128)

    kernel = functools.partial(_backtest_kernel, n=n, top_k=top_k)
    out = pl.pallas_call(
        kernel,
        out_shape=jax.ShapeDtypeStruct((1, 1), jnp.float32),
        grid=(1,),
        in_specs=[pl.BlockSpec((5, r, _LANE), lambda i: (0, 0, 0))],
        out_specs=pl.BlockSpec(memory_space=pltpu.MemorySpace.SMEM),
        compiler_params=pltpu.CompilerParams(
            dimension_semantics=("arbitrary",),
            vmem_limit_bytes=48 * 1024 * 1024),
    )(packed)
    return out[0, 0]


def _reference(predictions, targets, last_features, min_vals, max_vals,
               choose_top_percent=0.05):
    p = np.asarray(predictions, np.float64)
    tg = np.asarray(targets, np.float64)
    lf_raw = np.asarray(last_features, np.float64)
    mn = np.asarray(min_vals, np.float64)
    mx = np.asarray(max_vals, np.float64)
    rng = mx - mn
    lf = lf_raw * rng + mn
    lp = p[:, -1] * rng + mn
    lt = tg[:, -1] * rng + mn
    pred_ret = (lp - lf) / lf
    act_ret = (lt - lf) / lf
    k = int(choose_top_percent * len(pred_ret))
    top = np.argsort(pred_ret)[-k:]
    return float(act_ret[top].mean() - act_ret.mean())


def _run_case(key, n, t, top_pct):
    k1, k2, k3, k4, k5 = jax.random.split(key, 5)
    predictions = jax.random.uniform(k1, (n, t), dtype=jnp.float32)
    targets = jax.random.uniform(k2, (n, t), dtype=jnp.float32)
    last_features = jax.random.uniform(k3, (n,), dtype=jnp.float32)
    min_vals = 1.0 + jax.random.uniform(k4, (n,), dtype=jnp.float32)   # >= 1 (no div-by-zero)
    max_vals = min_vals + 1.0 + jax.random.uniform(k5, (n,), dtype=jnp.float32)

    out = backtesting_profit_error(predictions, targets, last_features,
                                   min_vals, max_vals, choose_top_percent=top_pct)
    out = jax.block_until_ready(out)
    ref = _reference(np.asarray(predictions), np.asarray(targets),
                     np.asarray(last_features), np.asarray(min_vals),
                     np.asarray(max_vals), choose_top_percent=top_pct)
    assert np.allclose(float(out), ref, rtol=1e-4, atol=1e-5), (n, float(out), ref)


if __name__ == "__main__":
    key = jax.random.PRNGKey(0)
    kc1, kc2 = jax.random.split(key, 2)

    # Small case: N=64, T=8 -> k = int(0.05*64) = 3 (iterative knock-out path).
    _run_case(kc1, 64, 8, 0.05)

    # Larger case: N=1024, T=4 -> k = 51 (fixed-pass threshold-selection path).
    _run_case(kc2, 1024, 4, 0.05)

    print("KERNEL_OK")
</pallas_src>

<mosaic_0001>
module attributes {stable_mosaic.version = 11 : i64} {
  func.func @_backtest_kernel(%arg0: i32, %arg1: memref<5x8x128xf32, #tpu.memory_space<vmem>>, %arg2: memref<1x1xf32, #tpu.memory_space<smem>>) attributes {dimension_semantics = [#tpu.dimension_semantics<arbitrary>], iteration_bounds = array<i64: 1>, scalar_prefetch = 0 : i64, scratch_operands = 0 : i64, tpu.core_type = #tpu.core_type<tc>, window_params = [{pipeline_mode = #tpu.pipeline_mode<synchronous>, transform_indices = @transform_0, window_bounds = array<i64: 5, 8, 128>}, {transform_indices = @transform_1, window_bounds = array<i64: 1, 1>}]} {
    %c0 = arith.constant 0 : index
    %c0_0 = arith.constant 0 : index
    %c0_1 = arith.constant 0 : index
    %0 = vector.load %arg1[%c0, %c0_0, %c0_1] : memref<5x8x128xf32, #tpu.memory_space<vmem>>, vector<1x8x128xf32>
    %1 = vector.shape_cast %0 : vector<1x8x128xf32> to vector<8x128xf32>
    %c1 = arith.constant 1 : index
    %c0_2 = arith.constant 0 : index
    %c0_3 = arith.constant 0 : index
    %2 = vector.load %arg1[%c1, %c0_2, %c0_3] : memref<5x8x128xf32, #tpu.memory_space<vmem>>, vector<1x8x128xf32>
    %3 = vector.shape_cast %2 : vector<1x8x128xf32> to vector<8x128xf32>
    %c2 = arith.constant 2 : index
    %c0_4 = arith.constant 0 : index
    %c0_5 = arith.constant 0 : index
    %4 = vector.load %arg1[%c2, %c0_4, %c0_5] : memref<5x8x128xf32, #tpu.memory_space<vmem>>, vector<1x8x128xf32>
    %5 = vector.shape_cast %4 : vector<1x8x128xf32> to vector<8x128xf32>
    %c3 = arith.constant 3 : index
    %c0_6 = arith.constant 0 : index
    %c0_7 = arith.constant 0 : index
    %6 = vector.load %arg1[%c3, %c0_6, %c0_7] : memref<5x8x128xf32, #tpu.memory_space<vmem>>, vector<1x8x128xf32>
    %7 = vector.shape_cast %6 : vector<1x8x128xf32> to vector<8x128xf32>
    %c4 = arith.constant 4 : index
    %c0_8 = arith.constant 0 : index
    %c0_9 = arith.constant 0 : index
    %8 = vector.load %arg1[%c4, %c0_8, %c0_9] : memref<5x8x128xf32, #tpu.memory_space<vmem>>, vector<1x8x128xf32>
    %9 = vector.shape_cast %8 : vector<1x8x128xf32> to vector<8x128xf32>
    %10 = arith.subf %9, %7 : vector<8x128xf32>
    %11 = arith.mulf %5, %10 : vector<8x128xf32>
    %12 = arith.addf %11, %7 : vector<8x128xf32>
    %13 = arith.mulf %1, %10 : vector<8x128xf32>
    %14 = arith.addf %13, %7 : vector<8x128xf32>
    %15 = arith.mulf %3, %10 : vector<8x128xf32>
    %16 = arith.addf %15, %7 : vector<8x128xf32>
    %cst = arith.constant 1.000000e+00 : f32
    %17 = vector.broadcast %cst : f32 to vector<8x128xf32>
    %18 = arith.divf %17, %12 : vector<8x128xf32>
    %19 = arith.subf %14, %12 : vector<8x128xf32>
    %20 = arith.mulf %19, %18 : vector<8x128xf32>
    %21 = arith.subf %16, %12 : vector<8x128xf32>
    %22 = arith.mulf %21, %18 : vector<8x128xf32>
    %23 = vector.shape_cast %22 : vector<8x128xf32> to vector<1x8x128xf32>
    %cst_10 = arith.constant dense<0.000000e+00> : vector<1xf32>
    %24 = vector.multi_reduction <add>, %23, %cst_10 [1, 2] : vector<1x8x128xf32> to vector<1xf32>
    %25 = vector.shape_cast %24 : vector<1xf32> to vector<1x1x1xf32>
    %26 = vector.extract %25[0, 0, 0] : f32 from vector<1x1x1xf32>
    %cst_11 = arith.constant 6.400000e+01 : f32
    %27 = arith.divf %26, %cst_11 : f32
    %28 = vector.shape_cast %20 : vector<8x128xf32> to vector<1x8x128xf32>
    %cst_12 = arith.constant dense<0xFF800000> : vector<1xf32>
    %29 = vector.multi_reduction <maximumf>, %28, %cst_12 [1, 2] : vector<1x8x128xf32> to vector<1xf32>
    %30 = vector.shape_cast %29 : vector<1xf32> to vector<1x1x1xf32>
    %31 = vector.extract %30[0, 0, 0] : f32 from vector<1x1x1xf32>
    %32 = vector.broadcast %31 : f32 to vector<8x128xf32>
    %33 = arith.cmpf oge, %20, %32 : vector<8x128xf32>
    %cst_13 = arith.constant 0xFF800000 : f32
    %34 = vector.broadcast %cst_13 : f32 to vector<8x128xf32>
    %35 = arith.select %33, %34, %20 : vector<8x128xi1>, vector<8x128xf32>
    %36 = vector.shape_cast %35 : vector<8x128xf32> to vector<1x8x128xf32>
    %cst_14 = arith.constant dense<0xFF800000> : vector<1xf32>
    %37 = vector.multi_reduction <maximumf>, %36, %cst_14 [1, 2] : vector<1x8x128xf32> to vector<1xf32>
    %38 = vector.shape_cast %37 : vector<1xf32> to vector<1x1x1xf32>
    %39 = vector.extract %38[0, 0, 0] : f32 from vector<1x1x1xf32>
    %40 = vector.broadcast %39 : f32 to vector<8x128xf32>
    %41 = arith.cmpf oge, %35, %40 : vector<8x128xf32>
    %cst_15 = arith.constant 0xFF800000 : f32
    %42 = vector.broadcast %cst_15 : f32 to vector<8x128xf32>
    %43 = arith.select %41, %42, %35 : vector<8x128xi1>, vector<8x128xf32>
    %44 = vector.shape_cast %43 : vector<8x128xf32> to vector<1x8x128xf32>
    %cst_16 = arith.constant dense<0xFF800000> : vector<1xf32>
    %45 = vector.multi_reduction <maximumf>, %44, %cst_16 [1, 2] : vector<1x8x128xf32> to vector<1xf32>
    %46 = vector.shape_cast %45 : vector<1xf32> to vector<1x1x1xf32>
    %47 = vector.extract %46[0, 0, 0] : f32 from vector<1x1x1xf32>
    %48 = vector.broadcast %47 : f32 to vector<8x128xf32>
    %49 = arith.cmpf oge, %43, %48 : vector<8x128xf32>
    %cst_17 = arith.constant 0xFF800000 : f32
    %50 = vector.broadcast %cst_17 : f32 to vector<8x128xf32>
    %51 = arith.select %49, %50, %43 : vector<8x128xi1>, vector<8x128xf32>
    %cst_18 = arith.constant 0xFF800000 : f32
    %52 = vector.broadcast %cst_18 : f32 to vector<8x128xf32>
    %53 = arith.cmpf oeq, %51, %52 : vector<8x128xf32>
    %cst_19 = arith.constant 0.000000e+00 : f32
    %54 = vector.broadcast %cst_19 : f32 to vector<8x128xf32>
    %55 = arith.select %53, %22, %54 : vector<8x128xi1>, vector<8x128xf32>
    %56 = vector.shape_cast %55 : vector<8x128xf32> to vector<1x8x128xf32>
    %cst_20 = arith.constant dense<0.000000e+00> : vector<1xf32>
    %57 = vector.multi_reduction <add>, %56, %cst_20 [1, 2] : vector<1x8x128xf32> to vector<1xf32>
    %58 = vector.shape_cast %57 : vector<1xf32> to vector<1x1x1xf32>
    %59 = vector.extract %58[0, 0, 0] : f32 from vector<1x1x1xf32>
    %cst_21 = arith.constant 3.000000e+00 : f32
    %60 = arith.divf %59, %cst_21 : f32
    %61 = arith.subf %60, %27 : f32
    %c0_22 = arith.constant 0 : index
    %c0_23 = arith.constant 0 : index
    %62 = memref.load %arg2[%c0_22, %c0_23] : memref<1x1xf32, #tpu.memory_space<smem>>
    memref.store %61, %arg2[%c0_22, %c0_23] : memref<1x1xf32, #tpu.memory_space<smem>>
    return
  }
  func.func @transform_0(%arg0: i32) -> (i32, i32, i32) {
    %c0_i32 = arith.constant 0 : i32
    %c0_i32_0 = arith.constant 0 : i32
    %c0_i32_1 = arith.constant 0 : i32
    %c0_i32_2 = arith.constant 0 : i32
    return %c0_i32, %c0_i32_0, %c0_i32_1 : i32, i32, i32
  }
  func.func @transform_1(%arg0: i32) -> (i32, i32) {
    %c0_i32 = arith.constant 0 : i32
    %c0_i32_0 = arith.constant 0 : i32
    %c0_i32_1 = arith.constant 0 : i32
    return %c0_i32, %c0_i32_0 : i32, i32
  }
}

</mosaic_0001>

<bundles_post_ra>
// kernel: tpu_custom_call.1
= control target key start
LH: loop header
LB: loop body
LE: loop exit
PB: predicated region body
PF: predicated region fallthrough
CT: control target
= control target key end

     0   :  { %6 = vsyncpa [#allocation3], 0  ;;  %s195_s0 = inlined_call_operand.hbm [shape: f32[5,8,128], index: 0, kind: input, shape index: {}]   ;;  %s196_s1 = inlined_call_operand.hbm [shape: f32[1,1], index: 1, kind: output, shape index: {}]  }
   0x1   :  { %7 = vsyncpa [#allocation4], 0  ;;  %s172_s6 = smov [#allocation2]  }
   0x2   :  { %s13_s7 = sshll.u32 %s172_s6, 4  ;;  %s14_s7 = int_to_ptr.vmem [resolvable:$true] %s13_s7 }
   0x3   :  { %s148_s8 = scalar_lea.vmem %s14_s7, 640  ;;  %p153_p1 = scmp.lt.s32.totalorder %s14_s7, %s14_s7 }
   0x4   :  { %p149_p0 = scmp.ne.s32.totalorder %s14_s7, %s148_s8  ;;  %p154_p2 = scmp.lt.s32.totalorder %s148_s8, %s148_s8 }
   0x6   :  { %p155_p3 = por %p154_p2, %p153_p1 }
   0x8   :  { %p156_p4 = pnand %p155_p3, %p149_p0 }
   0xa   :  { %159 = shalt.err (!%p156_p4)
}
   0xb   :  { %s173_s9 = smov 128   ;;  %s174_s10 = smov 8  }
   0xc   :  { %19 = dma.hbm_to_vmem [thread:$0]  %s195_s0, 640, %s14_s7, [#allocation3], %s173_s9, %s173_s9, %s174_s10  }
   0xd   :  { %168 = dma.done.wait [#allocation3], 640  }
   0xe   :  { %169 = vsyncadd [#allocation3], 4294966656  ;;  %v29_v0 = vld [vmem:[#allocation2 + $0x18] sm:$0xff]  ;;  %v27_v1 = vld [vmem:[#allocation2 + $0x10] sm:$0xff]  ;;  %s175_s20 = smov [#allocation5]  }
   0xf   :  { %v31_v2 = vld [vmem:[#allocation2 + $0x20] sm:$0xff]  ;;  %v25_v6 = vld [vmem:[#allocation2 + $0x8] sm:$0xff] }
  0x10   :  { %v32_v3 = vsub.f32 %v31_v2, %v29_v0  ;;  %v23_v7 = vld [vmem:[#allocation2] sm:$0xff] }
  0x12   :  { %v33_v4 = vmul.f32 %v32_v3, %v27_v1  ;;  %v37_v8 = vmul.f32 %v32_v3, %v25_v6  ;;  %v35_v9 = vmul.f32 %v32_v3, %v23_v7 }
  0x14   :  { %v34_v5 = vadd.f32 %v33_v4, %v29_v0  ;;  %v38_v10 = vadd.f32 %v37_v8, %v29_v0  ;;  %v36_v11 = vadd.f32 %v35_v9, %v29_v0 }
  0x16   :  { %138 = vrcp.f32 %v34_v5  ;;  %v43_v12 = vsub.f32 %v38_v10, %v34_v5  ;;  %v41_v13 = vsub.f32 %v36_v11, %v34_v5 }
  0x23   :  { %v139_v14 = vpop.eup %138 }
  0x24   :  { %v44_v15 = vmul.f32 %v139_v14, %v43_v12  ;;  %v42_v16 = vmul.f32 %v139_v14, %v41_v13 }
  0x26   :  { %45 = vadd.xlane.f32.xlu0 %v44_v15 }
  0x2a   :  { %57 = vmax.xlane.f32.xlu0 %v42_v16 }
  0xaf   :  { %v46_v17 = vpop.xlane.xlu0 %45 }
  0xb0   :  { %v47_v18 = vrot.slane %v46_v17, 4 }
  0xb2   :  { %v48_v19 = vadd.f32 %v47_v18, %v46_v17 }
  0xb3   :  { %v58_v20 = vpop.xlane.xlu0 %57 }
  0xb4   :  { %v49_v21 = vrot.slane %v48_v19, 2  ;;  %v59_v22 = vrot.slane %v58_v20, 4 }
  0xb6   :  { %v60_v23 = vmax.f32 %v58_v20, %v59_v22  ;;  %v50_v24 = vadd.f32 %v49_v21, %v48_v19 }
  0xb8   :  { %v61_v25 = vrot.slane %v60_v23, 2  ;;  %v51_v26 = vrot.slane %v50_v24, 1 }
  0xba   :  { %v52_v27 = vadd.f32 %v51_v26, %v50_v24  ;;  %v62_v28 = vmax.f32 %v60_v23, %v61_v25 }
  0xbc   :  { %124 = vpush %v52_v27  ;;  %v63_v29 = vrot.slane %v62_v28, 1 }
  0xbe   :  { %v64_v30 = vmax.f32 %v62_v28, %v63_v29 }
  0xc0   :  { %126 = vpush %v64_v30 }
  0xed   :  { %s189_s0 = spop %124 }
  0xee   :  { %s56_s16 = smul.f32 0.015625, %s189_s0 }
  0xf1   :  { %s127_s13 = spop %126 }
  0xf2   :  { %v66_v31 = vstv %s127_s13 }
  0xf3   :  { %vm67_vm0 = vcmp.ge.f32.partialorder %v42_v16, %v66_v31 }
  0xf4   :  { %v68_v32 = vsel %vm67_vm0, -inf, %v42_v16 }
  0xf5   :  { %69 = vmax.xlane.f32.xlu1 %v68_v32 }
 0x17e   :  { %v70_v33 = vpop.xlane.xlu1 %69 }
 0x17f   :  { %v71_v34 = vrot.slane %v70_v33, 4 }
 0x181   :  { %v72_v35 = vmax.f32 %v70_v33, %v71_v34 }
 0x183   :  { %v73_v36 = vrot.slane %v72_v35, 2 }
 0x185   :  { %v74_v37 = vmax.f32 %v72_v35, %v73_v36 }
 0x187   :  { %v75_v38 = vrot.slane %v74_v37, 1 }
 0x189   :  { %v76_v39 = vmax.f32 %v74_v37, %v75_v38 }
 0x18b   :  { %128 = vpush %v76_v39 }
 0x1bc   :  { %s129_s14 = spop %128 }
 0x1bd   :  { %v78_v40 = vstv %s129_s14 }
 0x1be   :  { %vm79_vm1 = vcmp.ge.f32.partialorder %v68_v32, %v78_v40 }
 0x1bf   :  { %v80_v41 = vsel %vm79_vm1, -inf, %v68_v32 }
 0x1c0   :  { %81 = vmax.xlane.f32.xlu1 %v80_v41 }
 0x249   :  { %v82_v42 = vpop.xlane.xlu1 %81 }
 0x24a   :  { %v83_v43 = vrot.slane %v82_v42, 4 }
 0x24c   :  { %v84_v44 = vmax.f32 %v82_v42, %v83_v43 }
 0x24e   :  { %v85_v45 = vrot.slane %v84_v44, 2 }
 0x250   :  { %v86_v46 = vmax.f32 %v84_v44, %v85_v45 }
 0x252   :  { %v87_v47 = vrot.slane %v86_v46, 1 }
 0x254   :  { %v88_v48 = vmax.f32 %v86_v46, %v87_v47 }
 0x256   :  { %130 = vpush %v88_v48 }
 0x287   :  { %s131_s15 = spop %130 }
 0x288   :  { %v90_v49 = vstv %s131_s15 }
 0x289   :  { %vm91_vm2 = vcmp.ge.f32.partialorder %v80_v41, %v90_v49 }
 0x28a   :  { %v92_v50 = vsel %vm91_vm2, -inf, %v80_v41 }
 0x28b   :  { %vm93_vm3 = vcmp.eq.f32.partialorder %v92_v50, -inf }
 0x28c   :  { %v94_v51 = vsel %vm93_vm3, %v44_v15, 0.0 }
 0x28d   :  { %95 = vadd.xlane.f32.xlu0 %v94_v51 }
 0x316   :  { %v96_v52 = vpop.xlane.xlu0 %95 }
 0x317   :  { %v97_v53 = vrot.slane %v96_v52, 4 }
 0x319   :  { %v98_v54 = vadd.f32 %v97_v53, %v96_v52 }
 0x31b   :  { %v99_v55 = vrot.slane %v98_v54, 2 }
 0x31d   :  { %v100_v56 = vadd.f32 %v99_v55, %v98_v54 }
 0x31f   :  { %v101_v57 = vrot.slane %v100_v56, 1 }
 0x321   :  { %v102_v58 = vadd.f32 %v101_v57, %v100_v56 }
 0x323   :  { %132 = vpush %v102_v58 }
 0x354   :  { %s133_s17 = spop %132 }
 0x355   :  { %s106_s18 = smul.f32 0.33333334, %s133_s17 }
 0x357   :  { %s107_s19 = ssub.f32 %s106_s18, %s56_s16 }
 0x359   :  { %109 = sst [smem:[#allocation5]] %s107_s19 }
 0x35a   :  { %117 = dma.smem_to_hbm %s175_s20, 16, %s196_s1, [#allocation4]  }
 0x35b   :  { %170 = dma.done.wait [#allocation4], 16  }
 0x35c   :  { %171 = vsyncadd [#allocation4], 4294967280 }
 0x35d   :  { %121 = sfence }
 0x35e   :  { %122 = vsyncpa [#allocation3], 1 }
 0x35f   :  { %123 = vsyncpa [#allocation4], 1 }

</bundles_post_ra>
